<compile_context>
chip_gen: v7x
topology: tpu7x:2x2x1
jax: 0.10.0
libtpu: 0.0.40
codegen_flags: <defaults>
</compile_context>

<pallas_src>
import functools
import math

import jax
import jax.numpy as jnp
from jax import lax
from jax.experimental import pallas as pl
from jax.experimental.pallas import tpu as pltpu


def _encoder_layer_kernel(x_ref, wqkv_ref, bqkv_ref, wo_ref, bo_ref,
                          w1_ref, b1_ref, w2_ref, b2_ref, o_ref,
                          *, nhead, head_dim, compute_dtype):
    """One grid step == one batch element. x_ref/o_ref: (1, S, E)."""
    E = x_ref.shape[2]

    x = x_ref[0]                                  # (S, E) f32
    xc = x.astype(compute_dtype)

    def mm(a, w_ref):
        # MXU matmul: operands in compute_dtype (bf16 by default), f32 accumulate.
        return jnp.dot(a.astype(compute_dtype), w_ref[...],
                       preferred_element_type=jnp.float32)

    # ---- fused Q/K/V in-projection: one wide (E -> 3E) MXU pass ----
    # 1/sqrt(Dh) is pre-folded into the q columns of wqkv/bqkv (wrapper).
    qkv = mm(xc, wqkv_ref) + bqkv_ref[...]        # (S, 3E) f32

    # ---- multi-head attention: unrolled per-head loop (static lane slices) ----
    # Keeps only one (S, S) score block live and lets the scheduler interleave
    # MXU (scores / PV) of one head with EUP/XLU (exp / row-sum) of another.
    ctxs = []
    for h in range(nhead):
        lo = h * head_dim
        qh = qkv[:, lo:lo + head_dim]             # (S, Dh) f32 (scale folded)
        kh = qkv[:, E + lo:E + lo + head_dim]
        vh = qkv[:, 2 * E + lo:2 * E + lo + head_dim]

        # q @ k^T without materializing a transpose (contract last dims).
        s = lax.dot_general(qh.astype(compute_dtype), kh.astype(compute_dtype),
                            (((1,), (1,)), ((), ())),
                            preferred_element_type=jnp.float32)   # (S, S)
        m = jnp.max(s, axis=-1, keepdims=True)
        p = jnp.exp(s - m)
        l = jnp.sum(p, axis=-1, keepdims=True)                     # (S, 1)
        ctx = jnp.dot(p.astype(compute_dtype), vh.astype(compute_dtype),
                      preferred_element_type=jnp.float32)           # (S, Dh)
        # Deferred softmax normalization on the small (S, Dh) context (EUP slot).
        ctxs.append(ctx * pl.reciprocal(l, approx=True))
    attn = jnp.concatenate(ctxs, axis=-1)         # (S, E) f32

    # ---- out-projection + residual (dropout1 = identity in eval) ----
    x1 = x + mm(attn, wo_ref) + bo_ref[...]

    # ---- feed-forward (relu) + residual (dropouts = identity in eval) ----
    h1 = jnp.maximum(mm(x1, w1_ref) + b1_ref[...], 0.0)
    ff = mm(h1, w2_ref) + b2_ref[...]

    # Lane-dense full-width store of this batch element's (S, E) slab.
    o_ref[0] = (x1 + ff).astype(o_ref.dtype)


def _vmem_limit_bytes():
    # Generation-aware budget: ~75% of physical VMEM (v5e/v6e 128 MiB -> 96 MiB,
    # v7x 64 MiB -> 48 MiB) instead of the 32 MiB scoped default.
    try:
        cap = int(pltpu.get_tpu_info().vmem_capacity_bytes)
    except Exception:
        cap = 0
    if cap <= 0:
        cap = 64 * 1024 * 1024
    return max(32 * 1024 * 1024, min((cap * 3) // 4, 112 * 1024 * 1024))


def encoder_layer_forward(src, params, nhead, *, compute_dtype=jnp.bfloat16):
    """src: (S, B, E) float32 (batch_first=False, like the PyTorch module)."""
    S, B, E = src.shape
    Dh = E // nhead
    FF = params["w1_t"].shape[1]

    # Batch-major so batch is the parallel grid axis and the per-step head
    # split is a pure lane slice inside the kernel (no in-kernel transposes).
    x_bse = jnp.transpose(src, (1, 0, 2))         # (B, S, E)

    # MXU operands pre-cast once in the wrapper (halves weight VMEM footprint
    # and load traffic on the bf16 path); biases stay f32.
    wqkv = params["wqkv_t"].astype(compute_dtype)
    wo = params["wo_t"].astype(compute_dtype)
    w1 = params["w1_t"].astype(compute_dtype)
    w2 = params["w2_t"].astype(compute_dtype)

    kernel = functools.partial(_encoder_layer_kernel, nhead=nhead,
                               head_dim=Dh, compute_dtype=compute_dtype)

    def const_spec(*shape):
        nd = len(shape)
        # Grid-invariant block: same block index every step -> fetched once.
        return pl.BlockSpec(shape, lambda b, _nd=nd: (0,) * _nd)

    in_specs = [
        pl.BlockSpec((1, S, E), lambda b: (b, 0, 0)),   # x, one batch elem/step
        const_spec(E, 3 * E), const_spec(1, 3 * E),     # wqkv, bqkv
        const_spec(E, E),     const_spec(1, E),         # wo, bo
        const_spec(E, FF),    const_spec(1, FF),        # w1, b1
        const_spec(FF, E),    const_spec(1, E),         # w2, b2
    ]
    out_specs = pl.BlockSpec((1, S, E), lambda b: (b, 0, 0))

    out = pl.pallas_call(
        kernel,
        out_shape=jax.ShapeDtypeStruct((B, S, E), src.dtype),
        grid=(B,),
        in_specs=in_specs,
        out_specs=out_specs,
        compiler_params=pltpu.CompilerParams(
            dimension_semantics=("parallel",),          # v7x: both TensorCores
            vmem_limit_bytes=_vmem_limit_bytes()),
    )(x_bse, wqkv, params["bqkv"], wo, params["bo"],
      w1, params["b1"], w2, params["b2"])

    return jnp.transpose(out, (1, 0, 2))                # back to (S, B, E)


def make_params(in_proj_w, in_proj_b, out_proj_w, out_proj_b,
                lin1_w, lin1_b, lin2_w, lin2_b, nhead):
    """PyTorch-layout weights -> kernel-ready params (one-time prep).

    Fuses Q/K/V into one (E, 3E) weight and folds 1/sqrt(Dh) into the q
    columns so the kernel never applies the softmax scale.
    """
    E = in_proj_w.shape[1]
    Dh = E // nhead
    scale = 1.0 / math.sqrt(Dh)
    wq, wk, wv = in_proj_w[:E], in_proj_w[E:2 * E], in_proj_w[2 * E:]
    bq, bk, bv = in_proj_b[:E], in_proj_b[E:2 * E], in_proj_b[2 * E:]
    wqkv_t = jnp.concatenate([wq.T * scale, wk.T, wv.T], axis=1)     # (E, 3E)
    bqkv = jnp.concatenate([bq * scale, bk, bv]).reshape(1, 3 * E)
    return {
        "wqkv_t": wqkv_t, "bqkv": bqkv,
        "wo_t": out_proj_w.T, "bo": out_proj_b.reshape(1, E),
        "w1_t": lin1_w.T, "b1": lin1_b.reshape(1, -1),
        "w2_t": lin2_w.T, "b2": lin2_b.reshape(1, E),
    }


def _reference_forward(src, raw, nhead):
    """Pure-JAX reference mirroring the PyTorch module (eval mode)."""
    S, B, E = src.shape
    Dh = E // nhead
    x = jnp.transpose(src, (1, 0, 2)).astype(jnp.float32)  # (B, S, E)
    ipw, ipb = raw["in_proj_w"], raw["in_proj_b"]

    q = x @ ipw[:E].T + ipb[:E]
    k = x @ ipw[E:2 * E].T + ipb[E:2 * E]
    v = x @ ipw[2 * E:].T + ipb[2 * E:]

    def split(t):  # (B, S, E) -> (B, H, S, Dh)
        return jnp.transpose(t.reshape(B, S, nhead, Dh), (0, 2, 1, 3))

    qh, kh, vh = split(q), split(k), split(v)
    s = jnp.einsum("bhqd,bhkd->bhqk", qh, kh) / math.sqrt(Dh)
    p = jax.nn.softmax(s, axis=-1)
    o = jnp.einsum("bhqk,bhkd->bhqd", p, vh)
    o = jnp.transpose(o, (0, 2, 1, 3)).reshape(B, S, E)
    sa = o @ raw["out_proj_w"].T + raw["out_proj_b"]
    x1 = x + sa
    ff = jnp.maximum(x1 @ raw["lin1_w"].T + raw["lin1_b"], 0.0) @ raw["lin2_w"].T + raw["lin2_b"]
    return jnp.transpose(x1 + ff, (1, 0, 2))


if __name__ == "__main__":
    # Small shapes consistent with the module: seq=8, batch=2, d_model=32,
    # nhead=4, dim_feedforward=64.
    S, B, E, H, FF = 8, 2, 32, 4, 64

    key = jax.random.PRNGKey(0)
    ks = jax.random.split(key, 9)

    # PyTorch stores Linear weights as (out, in); prep transposes/fuses once.
    in_proj_w = jax.random.normal(ks[0], (3 * E, E), jnp.float32) * 0.1
    in_proj_b = jax.random.normal(ks[1], (3 * E,), jnp.float32) * 0.1
    out_proj_w = jax.random.normal(ks[2], (E, E), jnp.float32) * 0.1
    out_proj_b = jax.random.normal(ks[3], (E,), jnp.float32) * 0.1
    lin1_w = jax.random.normal(ks[4], (FF, E), jnp.float32) * 0.1
    lin1_b = jax.random.normal(ks[5], (FF,), jnp.float32) * 0.1
    lin2_w = jax.random.normal(ks[6], (E, FF), jnp.float32) * 0.1
    lin2_b = jax.random.normal(ks[7], (E,), jnp.float32) * 0.1
    src = jax.random.normal(ks[8], (S, B, E), jnp.float32)

    raw = dict(in_proj_w=in_proj_w, in_proj_b=in_proj_b,
               out_proj_w=out_proj_w, out_proj_b=out_proj_b,
               lin1_w=lin1_w, lin1_b=lin1_b, lin2_w=lin2_w, lin2_b=lin2_b)
    params = make_params(in_proj_w, in_proj_b, out_proj_w, out_proj_b,
                         lin1_w, lin1_b, lin2_w, lin2_b, nhead=H)

    ref = _reference_forward(src, raw, H)

    # Default bf16 MXU-operand path (f32 accumulation / elementwise).
    out_bf16 = jax.block_until_ready(encoder_layer_forward(src, params, H))
    assert out_bf16.shape == (S, B, E)
    assert jnp.allclose(out_bf16, ref, atol=5e-2, rtol=5e-2), \
        "bf16 path mismatch vs reference"

    # f32 MXU-operand path (tighter parity check).
    out_f32 = jax.block_until_ready(
        encoder_layer_forward(src, params, H, compute_dtype=jnp.float32))
    assert jnp.allclose(out_f32, ref, atol=5e-3, rtol=5e-3), \
        "f32 path mismatch vs reference"

    print("KERNEL_OK")
</pallas_src>

<mosaic_0001>
module attributes {stable_mosaic.version = 11 : i64} {
  func.func @_encoder_layer_kernel(%arg0: i32, %arg1: memref<1x8x32xf32, #tpu.memory_space<vmem>>, %arg2: memref<32x96xbf16, #tpu.memory_space<vmem>>, %arg3: memref<1x96xf32, #tpu.memory_space<vmem>>, %arg4: memref<32x32xbf16, #tpu.memory_space<vmem>>, %arg5: memref<1x32xf32, #tpu.memory_space<vmem>>, %arg6: memref<32x64xbf16, #tpu.memory_space<vmem>>, %arg7: memref<1x64xf32, #tpu.memory_space<vmem>>, %arg8: memref<64x32xbf16, #tpu.memory_space<vmem>>, %arg9: memref<1x32xf32, #tpu.memory_space<vmem>>, %arg10: memref<1x8x32xf32, #tpu.memory_space<vmem>>) attributes {dimension_semantics = [#tpu.dimension_semantics<parallel>], iteration_bounds = array<i64: 2>, scalar_prefetch = 0 : i64, scratch_operands = 0 : i64, tpu.core_type = #tpu.core_type<tc>, window_params = [{transform_indices = @transform_0, window_bounds = array<i64: 1, 8, 32>}, {pipeline_mode = #tpu.pipeline_mode<synchronous>, transform_indices = @transform_1, window_bounds = array<i64: 32, 96>}, {pipeline_mode = #tpu.pipeline_mode<synchronous>, transform_indices = @transform_2, window_bounds = array<i64: 1, 96>}, {pipeline_mode = #tpu.pipeline_mode<synchronous>, transform_indices = @transform_3, window_bounds = array<i64: 32, 32>}, {pipeline_mode = #tpu.pipeline_mode<synchronous>, transform_indices = @transform_4, window_bounds = array<i64: 1, 32>}, {pipeline_mode = #tpu.pipeline_mode<synchronous>, transform_indices = @transform_5, window_bounds = array<i64: 32, 64>}, {pipeline_mode = #tpu.pipeline_mode<synchronous>, transform_indices = @transform_6, window_bounds = array<i64: 1, 64>}, {pipeline_mode = #tpu.pipeline_mode<synchronous>, transform_indices = @transform_7, window_bounds = array<i64: 64, 32>}, {pipeline_mode = #tpu.pipeline_mode<synchronous>, transform_indices = @transform_8, window_bounds = array<i64: 1, 32>}, {transform_indices = @transform_9, window_bounds = array<i64: 1, 8, 32>}]} {
    %c0 = arith.constant 0 : index
    %c0_0 = arith.constant 0 : index
    %c0_1 = arith.constant 0 : index
    %0 = vector.load %arg1[%c0, %c0_0, %c0_1] : memref<1x8x32xf32, #tpu.memory_space<vmem>>, vector<1x8x32xf32>
    %1 = vector.shape_cast %0 : vector<1x8x32xf32> to vector<8x32xf32>
    %2 = arith.truncf %1 : vector<8x32xf32> to vector<8x32xbf16>
    %c0_2 = arith.constant 0 : index
    %c0_3 = arith.constant 0 : index
    %3 = vector.load %arg2[%c0_2, %c0_3] : memref<32x96xbf16, #tpu.memory_space<vmem>>, vector<32x96xbf16>
    %cst = arith.constant dense<0.000000e+00> : vector<8x96xf32>
    %4 = tpu.matmul %2, %3, %cst {dimension_numbers = #tpu.dot_dimension_numbers<[1], [0], [0], [1], [0, 0, 1, 1], [], []>} : vector<8x32xbf16>, vector<32x96xbf16>, vector<8x96xf32> -> vector<8x96xf32>
    %c0_4 = arith.constant 0 : index
    %c0_5 = arith.constant 0 : index
    %5 = vector.load %arg3[%c0_4, %c0_5] : memref<1x96xf32, #tpu.memory_space<vmem>>, vector<1x96xf32>
    %6 = vector.broadcast %5 : vector<1x96xf32> to vector<8x96xf32>
    %7 = arith.addf %4, %6 : vector<8x96xf32>
    %8 = vector.extract_strided_slice %7 {offsets = [0, 0], sizes = [8, 8], strides = [1, 1]} : vector<8x96xf32> to vector<8x8xf32>
    %9 = vector.extract_strided_slice %7 {offsets = [0, 32], sizes = [8, 8], strides = [1, 1]} : vector<8x96xf32> to vector<8x8xf32>
    %10 = vector.extract_strided_slice %7 {offsets = [0, 64], sizes = [8, 8], strides = [1, 1]} : vector<8x96xf32> to vector<8x8xf32>
    %11 = arith.truncf %8 : vector<8x8xf32> to vector<8x8xbf16>
    %12 = arith.truncf %9 : vector<8x8xf32> to vector<8x8xbf16>
    %cst_6 = arith.constant dense<0.000000e+00> : vector<8x8xf32>
    %13 = tpu.matmul %11, %12, %cst_6 {dimension_numbers = #tpu.dot_dimension_numbers<[1], [1], [0], [0], [0, 0, 1, 0], [], []>} : vector<8x8xbf16>, vector<8x8xbf16>, vector<8x8xf32> -> vector<8x8xf32>
    %cst_7 = arith.constant dense<0xFF800000> : vector<8xf32>
    %14 = vector.multi_reduction <maximumf>, %13, %cst_7 [1] : vector<8x8xf32> to vector<8xf32>
    %15 = vector.shape_cast %14 : vector<8xf32> to vector<8x1xf32>
    %16 = vector.broadcast %15 : vector<8x1xf32> to vector<8x8xf32>
    %17 = arith.subf %13, %16 : vector<8x8xf32>
    %18 = math.exp %17 : vector<8x8xf32>
    %cst_8 = arith.constant dense<0.000000e+00> : vector<8xf32>
    %19 = vector.multi_reduction <add>, %18, %cst_8 [1] : vector<8x8xf32> to vector<8xf32>
    %20 = vector.shape_cast %19 : vector<8xf32> to vector<8x1xf32>
    %21 = arith.truncf %18 : vector<8x8xf32> to vector<8x8xbf16>
    %22 = arith.truncf %10 : vector<8x8xf32> to vector<8x8xbf16>
    %cst_9 = arith.constant dense<0.000000e+00> : vector<8x8xf32>
    %23 = tpu.matmul %21, %22, %cst_9 {dimension_numbers = #tpu.dot_dimension_numbers<[1], [0], [0], [1], [0, 0, 1, 1], [], []>} : vector<8x8xbf16>, vector<8x8xbf16>, vector<8x8xf32> -> vector<8x8xf32>
    %24 = tpu.reciprocal %20 {approx = true} : vector<8x1xf32> -> vector<8x1xf32>
    %25 = vector.broadcast %24 : vector<8x1xf32> to vector<8x8xf32>
    %26 = arith.mulf %23, %25 : vector<8x8xf32>
    %27 = vector.extract_strided_slice %7 {offsets = [0, 8], sizes = [8, 8], strides = [1, 1]} : vector<8x96xf32> to vector<8x8xf32>
    %28 = vector.extract_strided_slice %7 {offsets = [0, 40], sizes = [8, 8], strides = [1, 1]} : vector<8x96xf32> to vector<8x8xf32>
    %29 = vector.extract_strided_slice %7 {offsets = [0, 72], sizes = [8, 8], strides = [1, 1]} : vector<8x96xf32> to vector<8x8xf32>
    %30 = arith.truncf %27 : vector<8x8xf32> to vector<8x8xbf16>
    %31 = arith.truncf %28 : vector<8x8xf32> to vector<8x8xbf16>
    %cst_10 = arith.constant dense<0.000000e+00> : vector<8x8xf32>
    %32 = tpu.matmul %30, %31, %cst_10 {dimension_numbers = #tpu.dot_dimension_numbers<[1], [1], [0], [0], [0, 0, 1, 0], [], []>} : vector<8x8xbf16>, vector<8x8xbf16>, vector<8x8xf32> -> vector<8x8xf32>
    %cst_11 = arith.constant dense<0xFF800000> : vector<8xf32>
    %33 = vector.multi_reduction <maximumf>, %32, %cst_11 [1] : vector<8x8xf32> to vector<8xf32>
    %34 = vector.shape_cast %33 : vector<8xf32> to vector<8x1xf32>
    %35 = vector.broadcast %34 : vector<8x1xf32> to vector<8x8xf32>
    %36 = arith.subf %32, %35 : vector<8x8xf32>
    %37 = math.exp %36 : vector<8x8xf32>
    %cst_12 = arith.constant dense<0.000000e+00> : vector<8xf32>
    %38 = vector.multi_reduction <add>, %37, %cst_12 [1] : vector<8x8xf32> to vector<8xf32>
    %39 = vector.shape_cast %38 : vector<8xf32> to vector<8x1xf32>
    %40 = arith.truncf %37 : vector<8x8xf32> to vector<8x8xbf16>
    %41 = arith.truncf %29 : vector<8x8xf32> to vector<8x8xbf16>
    %cst_13 = arith.constant dense<0.000000e+00> : vector<8x8xf32>
    %42 = tpu.matmul %40, %41, %cst_13 {dimension_numbers = #tpu.dot_dimension_numbers<[1], [0], [0], [1], [0, 0, 1, 1], [], []>} : vector<8x8xbf16>, vector<8x8xbf16>, vector<8x8xf32> -> vector<8x8xf32>
    %43 = tpu.reciprocal %39 {approx = true} : vector<8x1xf32> -> vector<8x1xf32>
    %44 = vector.broadcast %43 : vector<8x1xf32> to vector<8x8xf32>
    %45 = arith.mulf %42, %44 : vector<8x8xf32>
    %46 = vector.extract_strided_slice %7 {offsets = [0, 16], sizes = [8, 8], strides = [1, 1]} : vector<8x96xf32> to vector<8x8xf32>
    %47 = vector.extract_strided_slice %7 {offsets = [0, 48], sizes = [8, 8], strides = [1, 1]} : vector<8x96xf32> to vector<8x8xf32>
    %48 = vector.extract_strided_slice %7 {offsets = [0, 80], sizes = [8, 8], strides = [1, 1]} : vector<8x96xf32> to vector<8x8xf32>
    %49 = arith.truncf %46 : vector<8x8xf32> to vector<8x8xbf16>
    %50 = arith.truncf %47 : vector<8x8xf32> to vector<8x8xbf16>
    %cst_14 = arith.constant dense<0.000000e+00> : vector<8x8xf32>
    %51 = tpu.matmul %49, %50, %cst_14 {dimension_numbers = #tpu.dot_dimension_numbers<[1], [1], [0], [0], [0, 0, 1, 0], [], []>} : vector<8x8xbf16>, vector<8x8xbf16>, vector<8x8xf32> -> vector<8x8xf32>
    %cst_15 = arith.constant dense<0xFF800000> : vector<8xf32>
    %52 = vector.multi_reduction <maximumf>, %51, %cst_15 [1] : vector<8x8xf32> to vector<8xf32>
    %53 = vector.shape_cast %52 : vector<8xf32> to vector<8x1xf32>
    %54 = vector.broadcast %53 : vector<8x1xf32> to vector<8x8xf32>
    %55 = arith.subf %51, %54 : vector<8x8xf32>
    %56 = math.exp %55 : vector<8x8xf32>
    %cst_16 = arith.constant dense<0.000000e+00> : vector<8xf32>
    %57 = vector.multi_reduction <add>, %56, %cst_16 [1] : vector<8x8xf32> to vector<8xf32>
    %58 = vector.shape_cast %57 : vector<8xf32> to vector<8x1xf32>
    %59 = arith.truncf %56 : vector<8x8xf32> to vector<8x8xbf16>
    %60 = arith.truncf %48 : vector<8x8xf32> to vector<8x8xbf16>
    %cst_17 = arith.constant dense<0.000000e+00> : vector<8x8xf32>
    %61 = tpu.matmul %59, %60, %cst_17 {dimension_numbers = #tpu.dot_dimension_numbers<[1], [0], [0], [1], [0, 0, 1, 1], [], []>} : vector<8x8xbf16>, vector<8x8xbf16>, vector<8x8xf32> -> vector<8x8xf32>
    %62 = tpu.reciprocal %58 {approx = true} : vector<8x1xf32> -> vector<8x1xf32>
    %63 = vector.broadcast %62 : vector<8x1xf32> to vector<8x8xf32>
    %64 = arith.mulf %61, %63 : vector<8x8xf32>
    %65 = vector.extract_strided_slice %7 {offsets = [0, 24], sizes = [8, 8], strides = [1, 1]} : vector<8x96xf32> to vector<8x8xf32>
    %66 = vector.extract_strided_slice %7 {offsets = [0, 56], sizes = [8, 8], strides = [1, 1]} : vector<8x96xf32> to vector<8x8xf32>
    %67 = vector.extract_strided_slice %7 {offsets = [0, 88], sizes = [8, 8], strides = [1, 1]} : vector<8x96xf32> to vector<8x8xf32>
    %68 = arith.truncf %65 : vector<8x8xf32> to vector<8x8xbf16>
    %69 = arith.truncf %66 : vector<8x8xf32> to vector<8x8xbf16>
    %cst_18 = arith.constant dense<0.000000e+00> : vector<8x8xf32>
    %70 = tpu.matmul %68, %69, %cst_18 {dimension_numbers = #tpu.dot_dimension_numbers<[1], [1], [0], [0], [0, 0, 1, 0], [], []>} : vector<8x8xbf16>, vector<8x8xbf16>, vector<8x8xf32> -> vector<8x8xf32>
    %cst_19 = arith.constant dense<0xFF800000> : vector<8xf32>
    %71 = vector.multi_reduction <maximumf>, %70, %cst_19 [1] : vector<8x8xf32> to vector<8xf32>
    %72 = vector.shape_cast %71 : vector<8xf32> to vector<8x1xf32>
    %73 = vector.broadcast %72 : vector<8x1xf32> to vector<8x8xf32>
    %74 = arith.subf %70, %73 : vector<8x8xf32>
    %75 = math.exp %74 : vector<8x8xf32>
    %cst_20 = arith.constant dense<0.000000e+00> : vector<8xf32>
    %76 = vector.multi_reduction <add>, %75, %cst_20 [1] : vector<8x8xf32> to vector<8xf32>
    %77 = vector.shape_cast %76 : vector<8xf32> to vector<8x1xf32>
    %78 = arith.truncf %75 : vector<8x8xf32> to vector<8x8xbf16>
    %79 = arith.truncf %67 : vector<8x8xf32> to vector<8x8xbf16>
    %cst_21 = arith.constant dense<0.000000e+00> : vector<8x8xf32>
    %80 = tpu.matmul %78, %79, %cst_21 {dimension_numbers = #tpu.dot_dimension_numbers<[1], [0], [0], [1], [0, 0, 1, 1], [], []>} : vector<8x8xbf16>, vector<8x8xbf16>, vector<8x8xf32> -> vector<8x8xf32>
    %81 = tpu.reciprocal %77 {approx = true} : vector<8x1xf32> -> vector<8x1xf32>
    %82 = vector.broadcast %81 : vector<8x1xf32> to vector<8x8xf32>
    %83 = arith.mulf %80, %82 : vector<8x8xf32>
    %84 = tpu.concatenate %26, %45, %64, %83 in 1 : vector<8x8xf32>, vector<8x8xf32>, vector<8x8xf32>, vector<8x8xf32> -> vector<8x32xf32>
    %85 = arith.truncf %84 : vector<8x32xf32> to vector<8x32xbf16>
    %c0_22 = arith.constant 0 : index
    %c0_23 = arith.constant 0 : index
    %86 = vector.load %arg4[%c0_22, %c0_23] : memref<32x32xbf16, #tpu.memory_space<vmem>>, vector<32x32xbf16>
    %cst_24 = arith.constant dense<0.000000e+00> : vector<8x32xf32>
    %87 = tpu.matmul %85, %86, %cst_24 {dimension_numbers = #tpu.dot_dimension_numbers<[1], [0], [0], [1], [0, 0, 1, 1], [], []>} : vector<8x32xbf16>, vector<32x32xbf16>, vector<8x32xf32> -> vector<8x32xf32>
    %88 = arith.addf %1, %87 : vector<8x32xf32>
    %c0_25 = arith.constant 0 : index
    %c0_26 = arith.constant 0 : index
    %89 = vector.load %arg5[%c0_25, %c0_26] : memref<1x32xf32, #tpu.memory_space<vmem>>, vector<1x32xf32>
    %90 = vector.broadcast %89 : vector<1x32xf32> to vector<8x32xf32>
    %91 = arith.addf %88, %90 : vector<8x32xf32>
    %92 = arith.truncf %91 : vector<8x32xf32> to vector<8x32xbf16>
    %c0_27 = arith.constant 0 : index
    %c0_28 = arith.constant 0 : index
    %93 = vector.load %arg6[%c0_27, %c0_28] : memref<32x64xbf16, #tpu.memory_space<vmem>>, vector<32x64xbf16>
    %cst_29 = arith.constant dense<0.000000e+00> : vector<8x64xf32>
    %94 = tpu.matmul %92, %93, %cst_29 {dimension_numbers = #tpu.dot_dimension_numbers<[1], [0], [0], [1], [0, 0, 1, 1], [], []>} : vector<8x32xbf16>, vector<32x64xbf16>, vector<8x64xf32> -> vector<8x64xf32>
    %c0_30 = arith.constant 0 : index
    %c0_31 = arith.constant 0 : index
    %95 = vector.load %arg7[%c0_30, %c0_31] : memref<1x64xf32, #tpu.memory_space<vmem>>, vector<1x64xf32>
    %96 = vector.broadcast %95 : vector<1x64xf32> to vector<8x64xf32>
    %97 = arith.addf %94, %96 : vector<8x64xf32>
    %cst_32 = arith.constant 0.000000e+00 : f32
    %98 = vector.broadcast %cst_32 : f32 to vector<8x64xf32>
    %99 = arith.maximumf %97, %98 : vector<8x64xf32>
    %100 = arith.truncf %99 : vector<8x64xf32> to vector<8x64xbf16>
    %c0_33 = arith.constant 0 : index
    %c0_34 = arith.constant 0 : index
    %101 = vector.load %arg8[%c0_33, %c0_34] : memref<64x32xbf16, #tpu.memory_space<vmem>>, vector<64x32xbf16>
    %cst_35 = arith.constant dense<0.000000e+00> : vector<8x32xf32>
    %102 = tpu.matmul %100, %101, %cst_35 {dimension_numbers = #tpu.dot_dimension_numbers<[1], [0], [0], [1], [0, 0, 1, 1], [], []>} : vector<8x64xbf16>, vector<64x32xbf16>, vector<8x32xf32> -> vector<8x32xf32>
    %c0_36 = arith.constant 0 : index
    %c0_37 = arith.constant 0 : index
    %103 = vector.load %arg9[%c0_36, %c0_37] : memref<1x32xf32, #tpu.memory_space<vmem>>, vector<1x32xf32>
    %104 = vector.broadcast %103 : vector<1x32xf32> to vector<8x32xf32>
    %105 = arith.addf %102, %104 : vector<8x32xf32>
    %106 = arith.addf %91, %105 : vector<8x32xf32>
    %c0_38 = arith.constant 0 : index
    %c0_39 = arith.constant 0 : index
    %c0_40 = arith.constant 0 : index
    %107 = vector.load %arg10[%c0_38, %c0_39, %c0_40] : memref<1x8x32xf32, #tpu.memory_space<vmem>>, vector<1x8x32xf32>
    %108 = vector.shape_cast %107 : vector<1x8x32xf32> to vector<8x32xf32>
    %109 = vector.shape_cast %106 : vector<8x32xf32> to vector<1x8x32xf32>
    tpu.vector_store %arg10[%c0_38, %c0_39, %c0_40], %109 {strides = array<i32>} : memref<1x8x32xf32, #tpu.memory_space<vmem>>, vector<1x8x32xf32>,
    return
  }
  func.func @transform_0(%arg0: i32) -> (i32, i32, i32) {
    %c0_i32 = arith.constant 0 : i32
    %c0_i32_0 = arith.constant 0 : i32
    %c0_i32_1 = arith.constant 0 : i32
    return %arg0, %c0_i32, %c0_i32_0 : i32, i32, i32
  }
  func.func @transform_1(%arg0: i32) -> (i32, i32) {
    %c0_i32 = arith.constant 0 : i32
    %c0_i32_0 = arith.constant 0 : i32
    %c0_i32_1 = arith.constant 0 : i32
    return %c0_i32, %c0_i32_0 : i32, i32
  }
  func.func @transform_2(%arg0: i32) -> (i32, i32) {
    %c0_i32 = arith.constant 0 : i32
    %c0_i32_0 = arith.constant 0 : i32
    %c0_i32_1 = arith.constant 0 : i32
    return %c0_i32, %c0_i32_0 : i32, i32
  }
  func.func @transform_3(%arg0: i32) -> (i32, i32) {
    %c0_i32 = arith.constant 0 : i32
    %c0_i32_0 = arith.constant 0 : i32
    %c0_i32_1 = arith.constant 0 : i32
    return %c0_i32, %c0_i32_0 : i32, i32
  }
  func.func @transform_4(%arg0: i32) -> (i32, i32) {
    %c0_i32 = arith.constant 0 : i32
    %c0_i32_0 = arith.constant 0 : i32
    %c0_i32_1 = arith.constant 0 : i32
    return %c0_i32, %c0_i32_0 : i32, i32
  }
  func.func @transform_5(%arg0: i32) -> (i32, i32) {
    %c0_i32 = arith.constant 0 : i32
    %c0_i32_0 = arith.constant 0 : i32
    %c0_i32_1 = arith.constant 0 : i32
    return %c0_i32, %c0_i32_0 : i32, i32
  }
  func.func @transform_6(%arg0: i32) -> (i32, i32) {
    %c0_i32 = arith.constant 0 : i32
    %c0_i32_0 = arith.constant 0 : i32
    %c0_i32_1 = arith.constant 0 : i32
    return %c0_i32, %c0_i32_0 : i32, i32
  }
  func.func @transform_7(%arg0: i32) -> (i32, i32) {
    %c0_i32 = arith.constant 0 : i32
    %c0_i32_0 = arith.constant 0 : i32
    %c0_i32_1 = arith.constant 0 : i32
    return %c0_i32, %c0_i32_0 : i32, i32
  }
  func.func @transform_8(%arg0: i32) -> (i32, i32) {
    %c0_i32 = arith.constant 0 : i32
    %c0_i32_0 = arith.constant 0 : i32
    %c0_i32_1 = arith.constant 0 : i32
    return %c0_i32, %c0_i32_0 : i32, i32
  }
  func.func @transform_9(%arg0: i32) -> (i32, i32, i32) {
    %c0_i32 = arith.constant 0 : i32
    %c0_i32_0 = arith.constant 0 : i32
    %c0_i32_1 = arith.constant 0 : i32
    return %arg0, %c0_i32, %c0_i32_0 : i32, i32, i32
  }
}

</mosaic_0001>

<bundles_post_ra>
// kernel: tpu_custom_call.1
= control target key start
LH: loop header
LB: loop body
LE: loop exit
PB: predicated region body
PF: predicated region fallthrough
CT: control target
= control target key end

     0   :  { %14 = vsyncpa [#allocation3], 0  ;;  %s1853_s0 = inlined_call_operand.vmem [shape: f32[2,8,32], index: 0, kind: input, shape index: {}]   ;;  %s1854_s1 = inlined_call_operand.vmem [shape: bf16[32,96], index: 1, kind: input, shape index: {}]   ;;  %s1855_s2 = inlined_call_operand.vmem [shape: f32[1,96], index: 2, kind: input, shape index: {}]   ;;  %s1856_s3 = inlined_call_operand.vmem [shape: bf16[32,32], index: 3, kind: input, shape index: {}]   ;;  %s1857_s4 = inlined_call_operand.vmem [shape: f32[1,32], index: 4, kind: input, shape index: {}]   ;;  %s1858_s5 = inlined_call_operand.hbm [shape: bf16[32,64], index: 5, kind: input, shape index: {}]   ;;  %s1859_s6 = inlined_call_operand.vmem [shape: f32[1,64], index: 6, kind: input, shape index: {}]   ;;  %s1860_s7 = inlined_call_operand.vmem [shape: bf16[64,32], index: 7, kind: input, shape index: {}]   ;;  %s1861_s8 = inlined_call_operand.vmem [shape: f32[1,32], index: 8, kind: input, shape index: {}]   ;;  %s1862_s9 = inlined_call_operand.hbm [shape: f32[2,8,32], index: 9, kind: output, shape index: {}]  }
   0x1   :  { %15 = vsyncpa [#allocation4], 0 }
   0x2   :  { %17 = vsyncpa [#allocation4 + $0x1], 0  ;;  %s1592_s30 = smov 0   ;;  %s1594_s10 = smov 0  }
   0x3   :  { %s1596_s11 = smov 0   ;;  %s1598_s12 = smov 0  }
   0x4 LB: > { %s1613_s13 = sadd.s32 4294967295, %s1520_s12   ;;  %s1180_s14 = sadd.s32 4294967294, %s1520_s12   ;;  %s1520_s12 = sphi %s1598_s12, %s1878_s12   ;;  %s1516_s11 = sphi %s1596_s11, %s1877_s11   ;;  %s1512_s10 = sphi %s1594_s10, %s1876_s10   ;;  %s1508_s30 = sphi %s1592_s30, %s1875_s30  }
   0x5   : > { %s1617_s15 = sadd.s32 1, %s1520_s12   ;;  %s224_s16 = sadd.s32 1, %s1516_s11 }
   0x6   : > { %s221_s17 = ssub.s32 %s1520_s12, %s1617_s15  ;;  %p234_p0 = scmp.ne.s32.totalorder %s1516_s11, %s1512_s10 }
   0x7   : > { %p222_p1 = scmp.eq.s32.totalorder %s221_s17, 0  ;;  %p235_p2 = scmp.eq.s32.totalorder %s1613_s13, 1 }
   0x8   : > { %p240_p3 = scmp.ne.s32.totalorder %s1512_s10, %s1508_s30  ;;  %p241_p4 = scmp.eq.s32.totalorder %s1180_s14, 1 }
   0x9   : > { %s1628_s18 = scalar_select %p222_p1, %s1516_s11, %s224_s16  }
   0xa   : > { %p1630_p5 = por %p235_p2, %p234_p0  ;;  %p1634_p6 = por %p241_p4, %p240_p3 }
   0xb   : > { %p1181_p7 = scmp.ge.s32.totalorder %s1520_s12, 1  ;;  %p248_p8 = scmp.lt.s32.totalorder %s1520_s12, 3 }
   0xc   : > { %s1866_s19 = scalar_select %p1630_p5, 1, 0 }
   0xd   : > { %s1867_s20 = scalar_select %p1634_p6, 1, 0 }
   0xe   : > { %p1863_p9 = scmp.eq.s32.totalorder %s1613_s13, 0  ;;  %p1641_p10 = pnand %p1181_p7, %p248_p8 }
   0xf   : > { %s1522_s22 = smov [#allocation2]   ;;  %s1426_s27 = scalar_lea.hbm %s1858_s5, 256 }
  0x10   : > { %s1868_s21 = scalar_select %p1641_p10, 1, 0 }
  0x11   : > { %s272_s23 = sshll.u32 %s1522_s22, 4  ;;  %p1338_p11 = pneg %p1641_p10  ;;  %s273_s23 = int_to_ptr.vmem [resolvable:$true] %s272_s23 }
  0x12   : > { %p1427_p13 = scmp.ne.s32.totalorder %s1858_s5, %s1426_s27  ;;  %p1433_p3 = scmp.lt.u32.totalorder %s1426_s27, %s1858_s5 }
  0x13   : > { %p1649_p12 = pnand %p1863_p9, %p1338_p11 }
  0x15   : > { %p1428_p0 = pneg %p1649_p12 }
  0x17   : > { %p1429_p1 = pnand %p1428_p0, %p1427_p13 }
  0x19   : > { %p1430_p2 = pneg %p1429_p1 }
  0x1b   : > { %p1435_p4 = pnand %p1433_p3, %p1430_p2 }
  0x1d   : > { %1438 = shalt.err (!%p1435_p4)
}
  0x1e   : > { %s1439_s17 = scalar_lea.vmem %s273_s23, 256  ;;  %p1447_p9 = scmp.lt.s32.totalorder %s273_s23, %s273_s23 }
  0x1f   : > { %p1440_p7 = scmp.ne.s32.totalorder %s273_s23, %s1439_s17  ;;  %p1448_p6 = scmp.lt.s32.totalorder %s1439_s17, %s1439_s17 }
  0x21   : > { %p1442_p8 = pnand %p1440_p7, %p1428_p0  ;;  %p1449_p5 = por %p1448_p6, %p1447_p9 }
  0x23   : > { %p1443_p11 = pneg %p1442_p8 }
  0x25   : > { %p1450_p10 = pnand %p1449_p5, %p1443_p11 }
  0x27   : > { %1453 = shalt.err (!%p1450_p10)
}
  0x28   : > { %s1523_s22 = smov 64   ;;  %s1524_s25 = smov 4  }
  0x29   : > { %1341 = dma.hbm_to_vmem [thread:$0]  (!%p1649_p12), %s1858_s5, 256, %s273_s23, [#allocation3], %s1523_s22, %s1523_s22, %s1524_s25  }
  0x2a   : > { %p1870_p13 = scmp.ne.s32.totalorder %s1868_s21, 0 }
  0x2b   : > { %p1871_p1 = scmp.eq.s32.totalorder (!%p1870_p13), %s1613_s13, 0 }
  0x2c   : > { %304 = sbr.rel (%p1870_p13) target bundleno = 1824 (0x720), region = 56 }
  0x33   : > { %1499 = dma.done.wait (%p1871_p1), [#allocation3], 256   ;;  %p1872_p0 = pmov %p1871_p1 }
  0x34   : > { %p339_p5 = scmp.lt.s32.totalorder %s1613_s13, 1  ;;  %v1525_v0 = vmov 0.0   ;;  %vm1526_vm0 = vmmov 0   ;;  %v1400_v1 = vld [vmem:[%s1854_s1] sm:$0xff]   ;;  %v1401_v2 = vld [vmem:[%s1854_s1 + $0x8] sm:$0xff]   ;;  %vm369_vm1 = vcmask 261120  }
  0x35   : > { %1501 = vsyncadd (%p1872_p0), [#allocation3], 4294967040  ;;  %1248 = vmatprep.subr.bf16.mxu0 %v1525_v0  ;;  %1252 = vmatprep.mubr.msk.bf16.mxu0 %vm1526_vm0, %v1525_v0  ;;  %v1188_v5 = vld [vmem:[%s1855_s2] ss:$0 sm:$0xff]  ;;  %s1527_s28 = smov 120   ;;  %s1530_s24 = smov 88  }
  0x36   : > { %s340_s23 = scalar_select %p339_p5, %s1613_s13, 1  ;;  %1256 = vmatprep.subr.bf16.mxu1 %v1525_v0  ;;  %1258 = vmatprep.mubr.msk.bf16.mxu1 %vm1526_vm0, %v1525_v0  ;;  %vm417_vm2 = vcmask 64512   ;;  %vm479_vm3 = vcmask 1043456   ;;  %vm868_vm4 = vcmask 130048   ;;  %vm870_vm5 = vcmask 195584  }
  0x37   : > { %1249 = vmatpush3.bf16.msra.mxu0 %v1400_v1  ;;  %s1531_s27 = smov 72   ;;  %s1533_s14 = smov 104   ;;  %vm1049_vm6 = vcmask 523264  }
  0x38   : > { %s1187_s21 = sshll.u32 %s340_s23, 3  ;;  %1250 = vmatprep.subr.bf16.mxu0 %v1525_v0  ;;  %s1528_s23 = smov 96  }
  0x39   : > { %s342_s29 = scalar_lea.vmem %s1853_s0, %s1187_s21  ;;  %s1529_s21 = smov 80  }
  0x3a   : > { %v1692_v3 = vld [vmem:[%s342_s29] sm:$0xff]  ;;  %s1532_s29 = smov 112   ;;  %s1534_s16 = smov 56  }
  0x3b   : > { %v345_v4 = vpack.c.bf16 %v1692_v3, %v1692_v3  ;;  %1251 = vmatpush3.bf16.msra.mxu0 %v1401_v2  ;;  %s1535_s17 = smov 64   ;;  %s1536_s22 = smov 40  }
  0x3c   : > { %1262 = vmatprep.subr.bf16.mxu0 %v1525_v0  ;;  %s1537_s25 = smov 48   ;;  %s1538_s26 = smov 8  }
  0x3d   : > { %p1873_p9 = scmp.ne.s32.totalorder %s1866_s19, 0 }
  0x3e   : > { %1253 = vmatmul.mubr.msk.bf16.vlgmr.msra.gmra.mrb[0].mxu0 %vm369_vm1, %v345_v4 }
  0x3f   : > { %1264 = vmatprep.mubr.msk.bf16.mxu0 %vm1526_vm0, %v1525_v0 }
 0x111   : > { %v407_v6 = vpop.f32.mrb[0].mxu0 }
 0x112   : > { %v408_v7 = vadd.f32 %v1188_v5, %v407_v6  ;;  %v1254_v8 = vpop.f32.mrb[1].mxu0 }
 0x113   : > { %v410_v9 = vpop.f32.mrb[2].mxu0 }
 0x114   : > { %v1704_v10 = vpack.c.bf16 %v408_v7, %v408_v7  ;;  %v1255_v11 = vpop.f32.mrb[3].mxu0 }
 0x116   : > { %525 = vrot.lane.b32.xlu1 %v1704_v10, %s1527_s28  ;;  %415 = vrot.lane.b32.xlu0 %v1704_v10, %s1528_s23 }
 0x11a   : > { %637 = vrot.lane.b32.xlu1 %v1704_v10, %s1529_s21  ;;  %527 = vrot.lane.b32.xlu0 %v1704_v10, %s1530_s24 }
 0x11e   : > { %747 = vrot.lane.b32.xlu1 %v1704_v10, %s1531_s27  ;;  %635 = vrot.lane.b32.xlu0 %v1704_v10, %s1532_s29  ;;  %s1539_s27 = smov 16   ;;  %s1540_s29 = smov 24  }
 0x122   : > { %745 = vrot.lane.b32.xlu0 %v1704_v10, %s1533_s14  ;;  %s336_s14 = sand.u32 1, %s1512_s10  }
 0x188   : > { %v416_v12 = vpop.permute.xlu0 %415  ;;  %v526_v15 = vpop.permute.xlu1 %525 }
 0x189   : > { %v422_v13 = vsel %vm417_vm2, %v416_v12, 0 }
 0x18a   : > { %1257 = vmatpush3.bf16.xpose.msra.mxu1 %v422_v13 }
 0x18b   : > { %1268 = vmatprep.subr.bf16.mxu1 %v1525_v0 }
 0x18c   : > { %v528_v14 = vpop.permute.xlu0 %527  ;;  %v638_v17 = vpop.permute.xlu1 %637 }
 0x18d   : > { %v533_v16 = vsel %vm417_vm2, %v528_v14, 0  ;;  %v643_v18 = vsel %vm417_vm2, %v638_v17, 0 }
 0x190   : > { %v748_v19 = vpop.permute.xlu1 %747  ;;  %v636_v20 = vpop.permute.xlu0 %635 }
 0x191   : > { %1259 = vmatmul.mubr.msk.bf16.vlgmr.msra.gmra.mrb[0].mxu1 %vm417_vm2, %v1704_v10  ;;  %v753_v21 = vsel %vm417_vm2, %v748_v19, 0 }
 0x192   : > { %1269 = vmatpush3.bf16.xpose.msra.mxu1 %v533_v16  ;;  %1270 = vmatprep.mubr.msk.bf16.mxu1 %vm1526_vm0, %v1525_v0 }
 0x193   : > { %1280 = vmatprep.subr.bf16.mxu1 %v1525_v0 }
 0x194   : > { %v746_v22 = vpop.permute.xlu0 %745 }
 0x199   : > { %1271 = vmatmul.mubr.msk.bf16.vlgmr.msra.gmra.mrb[4].mxu1 %vm417_vm2, %v526_v15 }
 0x19a   : > { %1281 = vmatpush3.bf16.xpose.msra.mxu1 %v643_v18  ;;  %1282 = vmatprep.mubr.msk.bf16.mxu1 %vm1526_vm0, %v1525_v0 }
 0x19b   : > { %1292 = vmatprep.subr.bf16.mxu1 %v1525_v0 }
 0x1a1   : > { %1283 = vmatmul.mubr.msk.bf16.vlgmr.msra.gmra.mrb[8].mxu1 %vm417_vm2, %v636_v20 }
 0x1a2   : > { %1293 = vmatpush3.bf16.xpose.msra.mxu1 %v753_v21  ;;  %1294 = vmatprep.mubr.msk.bf16.mxu1 %vm1526_vm0, %v1525_v0 }
 0x1a3   : > { %1304 = vmatprep.subr.bf16.mxu1 %v1525_v0 }
 0x1a9   : > { %1295 = vmatmul.mubr.msk.bf16.vlgmr.msra.gmra.mrb[12].mxu1 %vm417_vm2, %v746_v22 }
 0x1aa   : > { %1308 = vmatprep.mubr.msk.bf16.mxu1 %vm1526_vm0, %v1525_v0 }
 0x264   : > { %v458_v23 = vpop.f32.mrb[0].mxu1 }
 0x265   : > { %v1260_v24 = vpop.f32.mrb[1].mxu1  ;;  %v464_v25 = vsel %vm417_vm2, %v458_v23, -inf }
 0x266   : > { %465 = vmax.xlane.f32.xlu1 %v464_v25  ;;  %v461_v26 = vpop.f32.mrb[2].mxu1  ;;  %v1402_v25 = vld [vmem:[%s1856_s3] sm:$0xff]  }
 0x267   : > { %v1261_v27 = vpop.f32.mrb[3].mxu1  ;;  %1305 = vmatpush3.bf16.msra.mxu1 %v1402_v25 }
 0x268   : > { %1306 = vmatprep.subr.bf16.mxu1 %v1525_v0  ;;  %v1403_v27 = vld [vmem:[%s1856_s3 + $0x8] sm:$0xff]  }
 0x26b   : > { %1307 = vmatpush3.bf16.msra.mxu1 %v1403_v27 }
 0x26c   : > { %v569_v28 = vpop.f32.mrb[4].mxu1  ;;  %1320 = vmatprep.subr.bf16.mxu1 %v1525_v0 }
 0x26d   : > { %v1272_v29 = vpop.f32.mrb[5].mxu1  ;;  %v575_v30 = vsel %vm417_vm2, %v569_v28, -inf }
 0x26e   : > { %576 = vmax.xlane.f32.xlu0 %v575_v30  ;;  %v572_v31 = vpop.f32.mrb[6].mxu1 }
 0x26f   : > { %v1273_v32 = vpop.f32.mrb[7].mxu1 }
 0x274   : > { %v679_v33 = vpop.f32.mrb[8].mxu1 }
 0x275   : > { %v1284_v34 = vpop.f32.mrb[9].mxu1  ;;  %v685_v35 = vsel %vm417_vm2, %v679_v33, -inf }
 0x276   : > { %686 = vmax.xlane.f32.xlu0 %v685_v35  ;;  %v682_v36 = vpop.f32.mrb[10].mxu1 }
 0x277   : > { %585 = vrot.lane.b32.xlu1 %v1704_v10, %s1534_s16  ;;  %v1285_v37 = vpop.f32.mrb[11].mxu1  ;;  %s1186_s16 = sshll.u32 %s336_s14, 3 }
 0x27c   : > { %v789_v38 = vpop.f32.mrb[12].mxu1 }
 0x27d   : > { %v1296_v39 = vpop.f32.mrb[13].mxu1  ;;  %v795_v42 = vsel %vm417_vm2, %v789_v38, -inf }
 0x27e   : > { %v792_v40 = vpop.f32.mrb[14].mxu1 }
 0x27f   : > { %v1297_v41 = vpop.f32.mrb[15].mxu1 }
 0x28c   : > { %474 = vrot.lane.b32.xlu0 %v1704_v10, %s1535_s17 }
 0x290   : > { %805 = vrot.lane.b32.xlu0 %v1704_v10, %s1536_s22 }
 0x29b   : > { %796 = vmax.xlane.f32.xlu1 %v795_v42 }
 0x2ac   : > { %695 = vrot.lane.b32.xlu1 %v1704_v10, %s1537_s25  ;;  %s1215_s25 = sshll.u32 %s1613_s13, 7  ;;  %s1096_s13 = scalar_lea.sflag [#allocation4], %s336_s14 }
 0x2ad   : > { %s1810_s24 = scalar_lea.hbm %s1862_s9, %s1215_s25 }
 0x2f3   : > { %v466_v43 = vpop.xlane.xlu1 %465 }
 0x2f4   : > { %v467_v44 = vsub.f32 %v458_v23, %v466_v43 }
 0x2f6   : > { %v468_v45 = vmul.f32 1.442695, %v467_v44 }
 0x2f7   : > { %v586_v55 = vpop.permute.xlu1 %585 }
 0x2f8   : > { %1410 = vpow2.f32 %v468_v45  ;;  %v591_v59 = vsel %vm479_vm3, %v586_v55, 0  ;;  %v1203_v55 = vld [vmem:[%s1857_s4] ss:$0 sm:$0xff] }
 0x2fb   : > { %v577_v46 = vpop.xlane.xlu0 %576 }
 0x2fc   : > { %v578_v47 = vsub.f32 %v569_v28, %v577_v46 }
 0x2fe   : > { %v579_v48 = vmul.f32 1.442695, %v578_v47 }
 0x300   : > { %1412 = vpow2.f32 %v579_v48 }
 0x302   : > { %v1411_v52 = vpop.eup %1410 }
 0x303   : > { %v687_v49 = vpop.xlane.xlu0 %686  ;;  %v473_v57 = vpack.c.bf16 %v1411_v52, %v1411_v52  ;;  %v470_v60 = vsel %vm417_vm2, %v1411_v52, 0.0  ;;  %v1406_v52 = vld [vmem:[%s1860_s7] sm:$0xff]  }
 0x304   : > { %v688_v50 = vsub.f32 %v679_v33, %v687_v49 }
 0x306   : > { %v689_v51 = vmul.f32 1.442695, %v688_v50  ;;  %v1404_v50 = vld [vmem:[#allocation2] sm:$0xff]  }
 0x307   : > { %v475_v53 = vpop.permute.xlu0 %474 }
 0x308   : > { %1414 = vpow2.f32 %v689_v51  ;;  %v481_v54 = vsel %vm479_vm3, %v475_v53, 0  ;;  %v1405_v51 = vld [vmem:[#allocation2 + $0x8] sm:$0xff]  }
 0x309   : > { %1263 = vmatpush3.bf16.msra.mxu0 %v481_v54  ;;  %v1407_v53 = vld [vmem:[%s1860_s7 + $0x8] sm:$0xff]  }
 0x30a   : > { %v1413_v56 = vpop.eup %1412  ;;  %1274 = vmatprep.subr.bf16.mxu0 %v1525_v0 }
 0x30b   : > { %v581_v58 = vsel %vm417_vm2, %v1413_v56, 0.0  ;;  %v584_v62 = vpack.c.bf16 %v1413_v56, %v1413_v56  ;;  %v806_v7 = vpop.permute.xlu0 %805 }
 0x30c   : > { %582 = vadd.xlane.f32.xlu1 %v581_v58  ;;  %1265 = vmatmul.mubr.msk.bf16.vlgmr.msra.gmra.mrb[4].mxu0 %vm417_vm2, %v473_v57  ;;  %v811_v9 = vsel %vm479_vm3, %v806_v7, 0 }
 0x30d   : > { %1275 = vmatpush3.bf16.msra.mxu0 %v591_v59  ;;  %1276 = vmatprep.mubr.msk.bf16.mxu0 %vm1526_vm0, %v1525_v0 }
 0x30e   : > { %1286 = vmatprep.subr.bf16.mxu0 %v1525_v0 }
 0x310   : > { %471 = vadd.xlane.f32.xlu1 %v470_v60 }
 0x312   : > { %v1415_v61 = vpop.eup %1414 }
 0x313   : > { %v691_v63 = vsel %vm417_vm2, %v1415_v61, 0.0  ;;  %v694_v8 = vpack.c.bf16 %v1415_v61, %v1415_v61 }
 0x314   : > { %692 = vadd.xlane.f32.xlu0 %v691_v63  ;;  %1277 = vmatmul.mubr.msk.bf16.vlgmr.msra.gmra.mrb[8].mxu0 %vm417_vm2, %v584_v62  ;;  %v1408_v62 = vld [vmem:[%s1860_s7 + $0x10] sm:$0xff]   ;;  %v1409_v63 = vld [vmem:[%s1860_s7 + $0x18] sm:$0xff]  }
 0x315   : > { %1288 = vmatprep.mubr.msk.bf16.mxu0 %vm1526_vm0, %v1525_v0 }
 0x328   : > { %v797_v1 = vpop.xlane.xlu1 %796 }
 0x329   : > { %v798_v2 = vsub.f32 %v789_v38, %v797_v1 }
 0x32b   : > { %v799_v4 = vmul.f32 1.442695, %v798_v2 }
 0x32c   : > { %v696_v5 = vpop.permute.xlu1 %695 }
 0x32d   : > { %1416 = vpow2.f32 %v799_v4  ;;  %v701_v6 = vsel %vm479_vm3, %v696_v5, 0 }
 0x32e   : > { %1287 = vmatpush3.bf16.msra.mxu0 %v701_v6 }
 0x32f   : > { %1298 = vmatprep.subr.bf16.mxu0 %v1525_v0 }
 0x331   : > { %1289 = vmatmul.mubr.msk.bf16.vlgmr.msra.gmra.mrb[12].mxu0 %vm417_vm2, %v694_v8 }
 0x332   : > { %1299 = vmatpush3.bf16.msra.mxu0 %v811_v9  ;;  %1300 = vmatprep.mubr.msk.bf16.mxu0 %vm1526_vm0, %v1525_v0 }
 0x333   : > { %1312 = vmatprep.subr.bf16.mxu0 %v1525_v0 }
 0x337   : > { %v1417_v10 = vpop.eup %1416 }
 0x338   : > { %v801_v11 = vsel %vm417_vm2, %v1417_v10, 0.0  ;;  %v804_v12 = vpack.c.bf16 %v1417_v10, %v1417_v10 }
 0x339   : > { %802 = vadd.xlane.f32.xlu0 %v801_v11 }
 0x33a   : > { %1301 = vmatmul.mubr.msk.bf16.vlgmr.msra.gmra.mrb[16].mxu0 %vm417_vm2, %v804_v12 }
 0x33b   : > { %1316 = vmatprep.mubr.msk.bf16.mxu0 %vm1526_vm0, %v1525_v0  ;;  %1313 = vmatpush3.bf16.msra.mxu0 %v1404_v50 }
 0x33c   : > { %1314 = vmatprep.subr.bf16.mxu0 %v1525_v0 }
 0x33f   : > { %1315 = vmatpush3.bf16.msra.mxu0 %v1405_v51 }
 0x399   : > { %v583_v13 = vpop.xlane.xlu1 %582 }
 0x39a   : > { %1418 = vrcp.f32 %v583_v13 }
 0x39d   : > { %v472_v40 = vpop.xlane.xlu1 %471 }
 0x3a1   : > { %v693_v24 = vpop.xlane.xlu0 %692 }
 0x3a2   : > { %1420 = vrcp.f32 %v693_v24 }
 0x3a4   : > { %v1419_v18 = vpop.eup %1418 }
 0x3ac   : > { %v1421_v28 = vpop.eup %1420 }
 0x3c6   : > { %v803_v26 = vpop.xlane.xlu0 %802 }
 0x3c7   : > { %1422 = vrcp.f32 %v803_v26 }
 0x3c8   : > { %1424 = vrcp.f32 %v472_v40 }
 0x3d1   : > { %v1423_v34 = vpop.eup %1422 }
 0x3d2   : > { %v1425_v41 = vpop.eup %1424 }
 0x3df   : > { %v517_v14 = vpop.f32.mrb[4].mxu0 }
 0x3e0   : > { %v1266_v15 = vpop.f32.mrb[5].mxu0  ;;  %v524_v44 = vmul.f32 %v1425_v41, %v517_v14 }
 0x3e1   : > { %v520_v16 = vpop.f32.mrb[6].mxu0 }
 0x3e2   : > { %v1267_v17 = vpop.f32.mrb[7].mxu0 }
 0x3e7   : > { %v627_v19 = vpop.f32.mrb[8].mxu0 }
 0x3e8   : > { %v634_v20 = vmul.f32 %v1419_v18, %v627_v19  ;;  %v1278_v21 = vpop.f32.mrb[9].mxu0 }
 0x3e9   : > { %v630_v22 = vpop.f32.mrb[10].mxu0 }
 0x3ea   : > { %856 = vrot.lane.b32.xlu0 %v634_v20, %s1538_s26  ;;  %v1279_v23 = vpop.f32.mrb[11].mxu0  ;;  %s338_s26 = scalar_lea.vmem [#allocation5], %s1186_s16 }
 0x3eb   : > { %s1109_s28 = sshll.u32 %s338_s26, 4  ;;  %s1812_s28 = int_to_ptr.vmem [resolvable:$true] %s1109_s28 }
 0x404   : > { %v737_v29 = vpop.f32.mrb[12].mxu0 }
 0x405   : > { %v744_v30 = vmul.f32 %v1421_v28, %v737_v29  ;;  %v1290_v31 = vpop.f32.mrb[13].mxu0 }
 0x406   : > { %v740_v32 = vpop.f32.mrb[14].mxu0 }
 0x407   : > { %860 = vrot.lane.b32.xlu1 %v744_v30, %s1539_s27  ;;  %v1291_v33 = vpop.f32.mrb[15].mxu0  ;;  %s1454_s27 = scalar_lea.vmem %s1812_s28, 128 }
 0x408   : > { %p1455_p6 = scmp.ne.s32.totalorder %s1812_s28, %s1454_s27 }
 0x40a   : > { %p1456_p10 = pnand %p1455_p6, %p1873_p9 }
 0x40c   : > { %p1457_p12 = pneg %p1456_p10 }
 0x40d   : > { %v847_v35 = vpop.f32.mrb[16].mxu0 }
 0x40e   : > { %v854_v36 = vmul.f32 %v1423_v34, %v847_v35  ;;  %v1302_v37 = vpop.f32.mrb[17].mxu0 }
 0x40f   : > { %v850_v38 = vpop.f32.mrb[18].mxu0 }
 0x410   : > { %864 = vrot.lane.b32.xlu1 %v854_v36, %s1540_s29  ;;  %v1303_v39 = vpop.f32.mrb[19].mxu0  ;;  %s1541_s29 = smov [#allocation5]  }
 0x411   : > { %s1458_s16 = sshll.u32 %s1541_s29, 4  ;;  %s1459_s16 = int_to_ptr.vmem [resolvable:$false] %s1458_s16 }
 0x412   : > { %s1460_s17 = scalar_lea.vmem %s1459_s16, 256  ;;  %p1461_p2 = scmp.lt.s32.totalorder %s1812_s28, %s1459_s16 }
 0x413   : > { %p1462_p3 = scmp.lt.s32.totalorder %s1460_s17, %s1454_s27 }
 0x415   : > { %p1463_p4 = por %p1462_p3, %p1461_p2 }
 0x417   : > { %p1464_p7 = pnand %p1463_p4, %p1457_p12 }
 0x45c   : > { %v857_v42 = vpop.permute.xlu0 %856 }
 0x45d   : > { %v867_v45 = vsel %vm417_vm2, %v524_v44, %v857_v42 }
 0x479   : > { %v861_v43 = vpop.permute.xlu1 %860 }
 0x47a   : > { %v869_v46 = vsel %vm868_vm4, %v867_v45, %v861_v43 }
 0x482   : > { %v865_v47 = vpop.permute.xlu1 %864 }
 0x483   : > { %v871_v48 = vsel %vm870_vm5, %v869_v46, %v865_v47 }
 0x484   : > { %v872_v49 = vpack.c.bf16 %v871_v48, %v871_v48 }
 0x486   : > { %1309 = vmatmul.mubr.msk.bf16.vlgmr.msra.gmra.mrb[16].mxu1 %vm369_vm1, %v872_v49 }
 0x487   : > { %1328 = vmatprep.mubr.msk.bf16.mxu1 %vm1526_vm0, %v1525_v0  ;;  %1321 = vmatpush3.bf16.msra.mxu1 %v1406_v52 }
 0x488   : > { %1322 = vmatprep.subr.bf16.mxu1 %v1525_v0 }
 0x48b   : > { %1323 = vmatpush3.bf16.msra.mxu1 %v1407_v53 }
 0x48c   : > { %1324 = vmatprep.subr.bf16.mxu1 %v1525_v0 }
 0x48f   : > { %1325 = vmatpush3.bf16.msra.mxu1 %v1408_v62 }
 0x490   : > { %1326 = vmatprep.subr.bf16.mxu1 %v1525_v0  ;;  %v1208_v0 = vld [vmem:[%s1861_s8] ss:$0 sm:$0xff] }
 0x493   : > { %1327 = vmatpush3.bf16.msra.mxu1 %v1409_v63 }
 0x559   : > { %v926_v54 = vpop.f32.mrb[16].mxu1 }
 0x55a   : > { %v932_v56 = vadd.f32 %v926_v54, %v1692_v3  ;;  %v1310_v57 = vpop.f32.mrb[17].mxu1  ;;  %v1204_v3 = vld [vmem:[%s1859_s6] ss:$0 sm:$0xff] }
 0x55b   : > { %v929_v58 = vpop.f32.mrb[18].mxu1 }
 0x55c   : > { %v940_v59 = vadd.f32 %v1203_v55, %v932_v56  ;;  %v1311_v60 = vpop.f32.mrb[19].mxu1 }
 0x55e   : > { %v941_v61 = vpack.c.bf16 %v940_v59, %v940_v59 }
 0x560   : > { %1317 = vmatmul.mubr.msk.bf16.vlgmr.msra.gmra.mrb[20].mxu0 %vm369_vm1, %v941_v61 }
 0x633   : > { %v1002_v1 = vpop.f32.mrb[20].mxu0 }
 0x634   : > { %v1003_v2 = vadd.f32 %v1204_v3, %v1002_v1  ;;  %v1318_v4 = vpop.f32.mrb[21].mxu0 }
 0x635   : > { %v1005_v5 = vpop.f32.mrb[22].mxu0 }
 0x636   : > { %v1008_v6 = vmax.f32 %v1003_v2, 0.0  ;;  %v1319_v7 = vpop.f32.mrb[23].mxu0 }
 0x638   : > { %v1009_v8 = vpack.c.bf16 %v1008_v6, %v1008_v6 }
 0x63a   : > { %1329 = vmatmul.mubr.msk.bf16.vlgmr.msra.gmra.mrb[20].mxu1 %vm1049_vm6, %v1009_v8 }
 0x70d   : > { %v1087_v9 = vpop.f32.mrb[20].mxu1 }
 0x70e   : > { %v1088_v10 = vadd.f32 %v1208_v0, %v1087_v9  ;;  %v1330_v11 = vpop.f32.mrb[21].mxu1 }
 0x70f   : > { %v1090_v12 = vpop.f32.mrb[22].mxu1 }
 0x710   : > { %v1093_v13 = vadd.f32 %v1088_v10, %v940_v59  ;;  %v1331_v14 = vpop.f32.mrb[23].mxu1 }
 0x712   : > { %1094 = vst.msk [vmem:[%s338_s26] sm:$0xff] %vm369_vm1, %v1093_v13 }
 0x713   : > { %1467 = shalt.err (!%p1464_p7)
}
 0x714   : > { %s1468_s14 = scalar_lea.hbm %s1810_s24, 128  ;;  %s1472_s26 = scalar_lea.hbm %s1862_s9, 256 }
 0x715   : > { %p1469_p8 = scmp.ne.s32.totalorder %s1810_s24, %s1468_s14  ;;  %p1473_p1 = scmp.lt.u32.totalorder %s1810_s24, %s1862_s9 }
 0x716   : > { %p1474_p0 = scmp.lt.u32.totalorder %s1472_s26, %s1468_s14  ;;  %p1476_p6 = scmp.lt.u32.totalorder %s1468_s14, %s1810_s24 }
 0x717   : > { %p1470_p11 = pnand %p1469_p8, %p1873_p9 }
 0x718   : > { %p1475_p5 = por %p1474_p0, %p1473_p1 }
 0x719   : > { %p1471_p13 = pneg %p1470_p11 }
 0x71a   : > { %p1477_p10 = por %p1476_p6, %p1475_p5 }
 0x71c   : > { %p1478_p12 = pnand %p1477_p10, %p1471_p13 }
 0x71e   : > { %1481 = shalt.err (!%p1478_p12)
}
 0x71f   : > { %1336 = dma.vmem_to_hbm [thread:$0]  (%p1873_p9), %s1812_s28, 128, %s1810_s24, %s1096_s13  }
 0x720 PF: > { %p1348_p2 = scmp.ge.s32.totalorder %s1520_s12, 2  ;;  %s1121_s27 = sand.u32 1, %s1508_s30  }
 0x721   : > { %p1874_p3 = scmp.ne.s32.totalorder %s1867_s20, 0  ;;  %s1122_s29 = scalar_lea.sflag [#allocation4], %s1121_s27 }
 0x723   : > { %p1343_p4 = pnand %p1348_p2, %p1874_p3 }
 0x725   : > { %1503 = dma.done.wait (!%p1343_p4), %s1122_s29, 128  }
 0x726   : > { %1505 = vsyncadd (!%p1343_p4), %s1122_s29, 4294967168  ;;  %p20_p7 = scmp.ge.s32.totalorder %s1617_s15, 4   ;;  %s1875_s30 = smov %s1512_s10 }
 0x727   : > { %s1876_s10 = smov %s1516_s11  ;;  %s1877_s11 = smov %s1628_s18 }
 0x728   : > { %s1878_s12 = smov %s1617_s15  ;;  %22 = sbr.rel (!%p20_p7) target bundleno = 4 (0x4), region = 96 }
 0x72f   :  { %1127 = vsyncpa [#allocation3], 1 }
 0x730   :  { %1129 = vsyncpa [#allocation3 + $0x1], 1 }
 0x731   :  { %1130 = vsyncpa [#allocation4], 1 }
 0x732   :  { %1132 = vsyncpa [#allocation4 + $0x1], 1 }

</bundles_post_ra>
